<compile_context>
chip_gen: v5e
topology: v5e:2x2
jax: 0.10.0
libtpu: 0.0.40
codegen_flags: <defaults>
</compile_context>

<pallas_src>
import jax
import jax.numpy as jnp
import numpy as np
from jax import lax
from jax.experimental import pallas as pl
from jax.experimental.pallas import tpu as pltpu


def _clip_kernel(x_ref, row_ref, cmax_ref, csum_ref):
    i = pl.program_id(0)
    tile_n, n_cols = x_ref.shape

    x = x_ref[...].astype(jnp.float32)

    # --- row-wise stable logsumexp (softmax over dim=-1 of x) ---
    m_r = jnp.max(x, axis=-1, keepdims=True)                       # (tile_n, 1)
    row_lse = m_r + jnp.log(
        jnp.sum(jnp.exp(x - m_r), axis=-1, keepdims=True))         # (tile_n, 1)

    # --- diagonal entries x[g, g] for the rows of this tile ---
    col_idx = lax.broadcasted_iota(jnp.int32, (tile_n, n_cols), 1)
    row_idx = i * tile_n + lax.broadcasted_iota(jnp.int32, (tile_n, n_cols), 0)
    diag = jnp.sum(jnp.where(col_idx == row_idx, x, 0.0),
                   axis=-1, keepdims=True)                         # (tile_n, 1)

    # Fused per-row term: 0.5*mean(row_lse - 2*diag) = 0.5*mean(rowLSE) - mean(diag)
    row_ref[...] = row_lse - 2.0 * diag

    # --- per-column partial max / sum-of-exp (cross-tile logsumexp combine) ---
    m_c = jnp.max(x, axis=0, keepdims=True)                        # (1, N)
    cmax_ref[...] = m_c[None]                                      # (1, 1, N)
    csum_ref[...] = jnp.sum(jnp.exp(x - m_c), axis=0, keepdims=True)[None]


def _pick_tile_n(n, itemsize, max_tile_n, vmem_budget_bytes):
    """Row-tile size: VMEM-budgeted, capped to keep enough grid steps."""
    np8 = ((n + 7) // 8) * 8
    # Double-buffered input block + ~4 tile-sized f32 temporaries per row.
    per_row_bytes = n * (2 * itemsize + 4 * 4)
    tile_n = max(8, vmem_budget_bytes // per_row_bytes)
    tile_n = min(int(tile_n), int(max_tile_n))
    # Keep >= 2-4 grid steps for v7x megacore sharding and per-core
    # DMA/compute overlap once the problem is big enough to amortise the
    # ~0.35us per-step overhead; tiny problems stay single-step.
    if np8 >= 1024:
        min_steps = 4
    elif np8 >= 512:
        min_steps = 2
    else:
        min_steps = 1
    steps_cap = ((-(-np8 // min_steps) + 7) // 8) * 8
    tile_n = min(tile_n, steps_cap, np8)
    return max(8, (tile_n // 8) * 8)


def clip_contrastive(x, *, max_tile_n=1024, vmem_budget_bytes=28 << 20):
    """loss = 0.5*(CE(x, arange) + CE(x.T, arange)) — CLIP contrastive loss."""
    N, N2 = x.shape
    assert N == N2, "CLIPContrastive expects a square (N, N) similarity matrix"

    tile_n = _pick_tile_n(N, jnp.dtype(x.dtype).itemsize,
                          max_tile_n, vmem_budget_bytes)
    num_tiles = -(-N // tile_n)
    Np = num_tiles * tile_n
    if Np != N:
        # Padded rows: large-negative fill -> ~0 contribution to the column
        # exp-sums; their per-row outputs are sliced off below.
        x = jnp.pad(x, ((0, Np - N), (0, 0)), constant_values=-1e30)

    out_shape = (
        jax.ShapeDtypeStruct((Np, 1), jnp.float32),            # rowLSE - 2*diag
        jax.ShapeDtypeStruct((num_tiles, 1, N), jnp.float32),  # col max partials
        jax.ShapeDtypeStruct((num_tiles, 1, N), jnp.float32),  # col exp-sum partials
    )

    row_term, cmax, csum = pl.pallas_call(
        _clip_kernel,
        out_shape=out_shape,
        grid_spec=pltpu.PrefetchScalarGridSpec(
            num_scalar_prefetch=0,
            grid=(num_tiles,),
            in_specs=[pl.BlockSpec((tile_n, N), lambda i: (i, 0))],
            out_specs=[
                pl.BlockSpec((tile_n, 1), lambda i: (i, 0)),
                pl.BlockSpec((1, 1, N), lambda i: (i, 0, 0)),
                pl.BlockSpec((1, 1, N), lambda i: (i, 0, 0)),
            ],
        ),
        compiler_params=pltpu.CompilerParams(
            dimension_semantics=("parallel",),
            vmem_limit_bytes=48 << 20,
        ),
    )(x)

    row_term = row_term[:N, 0]
    cmax = cmax[:, 0, :]
    csum = csum[:, 0, :]

    # Combine per-tile column partials into the full column logsumexp (tiny).
    col_m = jnp.max(cmax, axis=0)
    col_lse = col_m + jnp.log(
        jnp.sum(csum * jnp.exp(cmax - col_m[None, :]), axis=0))

    return 0.5 * (jnp.mean(row_term) + jnp.mean(col_lse))


def _reference(x):
    n = x.shape[0]
    labels = jnp.arange(n)
    loss_i = -jnp.mean(jax.nn.log_softmax(x, axis=-1)[labels, labels])
    loss_t = -jnp.mean(jax.nn.log_softmax(x.T, axis=-1)[labels, labels])
    return (loss_i + loss_t) / 2.0


if __name__ == "__main__":
    key = jax.random.PRNGKey(0)
    k1, k2 = jax.random.split(key)

    # CLIP batch: x is the (N, N) image-text similarity matrix.
    N = 16
    x = jax.random.normal(k1, (N, N), dtype=jnp.float32) * 4.0
    loss = jax.block_until_ready(jax.jit(clip_contrastive)(x))
    ref = _reference(x)
    assert np.allclose(np.asarray(loss), np.asarray(ref),
                       rtol=1e-5, atol=1e-5), (loss, ref)

    # Padded (N not a multiple of 8) path, single tile.
    N2 = 20
    x2 = jax.random.normal(k2, (N2, N2), dtype=jnp.float32) * 4.0
    loss2 = jax.block_until_ready(jax.jit(clip_contrastive)(x2))
    ref2 = _reference(x2)
    assert np.allclose(np.asarray(loss2), np.asarray(ref2),
                       rtol=1e-5, atol=1e-5), (loss2, ref2)

    # Multi-tile path: row padding + cross-tile column logsumexp combine.
    small_tile = jax.jit(lambda a: clip_contrastive(a, max_tile_n=8))
    loss3 = jax.block_until_ready(small_tile(x2))
    assert np.allclose(np.asarray(loss3), np.asarray(ref2),
                       rtol=1e-5, atol=1e-5), (loss3, ref2)

    print("KERNEL_OK")
</pallas_src>

<mosaic_0001>
module attributes {stable_mosaic.version = 11 : i64} {
  func.func @_clip_kernel(%arg0: i32, %arg1: memref<16x16xf32, #tpu.memory_space<vmem>>, %arg2: memref<16x1xf32, #tpu.memory_space<vmem>>, %arg3: memref<1x1x16xf32, #tpu.memory_space<vmem>>, %arg4: memref<1x1x16xf32, #tpu.memory_space<vmem>>) attributes {dimension_semantics = [#tpu.dimension_semantics<parallel>], iteration_bounds = array<i64: 1>, scalar_prefetch = 0 : i64, scratch_operands = 0 : i64, tpu.core_type = #tpu.core_type<tc>, window_params = [{transform_indices = @transform_0, window_bounds = array<i64: 16, 16>}, {transform_indices = @transform_1, window_bounds = array<i64: 16, 1>}, {transform_indices = @transform_2, window_bounds = array<i64: 1, 1, 16>}, {transform_indices = @transform_3, window_bounds = array<i64: 1, 1, 16>}]} {
    %c0 = arith.constant 0 : index
    %c0_0 = arith.constant 0 : index
    %0 = vector.load %arg1[%c0, %c0_0] : memref<16x16xf32, #tpu.memory_space<vmem>>, vector<16x16xf32>
    %cst = arith.constant dense<0xFF800000> : vector<16xf32>
    %1 = vector.multi_reduction <maximumf>, %0, %cst [1] : vector<16x16xf32> to vector<16xf32>
    %2 = vector.shape_cast %1 : vector<16xf32> to vector<16x1xf32>
    %3 = vector.broadcast %2 : vector<16x1xf32> to vector<16x16xf32>
    %4 = arith.subf %0, %3 : vector<16x16xf32>
    %5 = math.exp %4 : vector<16x16xf32>
    %cst_1 = arith.constant dense<0.000000e+00> : vector<16xf32>
    %6 = vector.multi_reduction <add>, %5, %cst_1 [1] : vector<16x16xf32> to vector<16xf32>
    %7 = vector.shape_cast %6 : vector<16xf32> to vector<16x1xf32>
    %8 = math.log %7 : vector<16x1xf32>
    %9 = arith.addf %2, %8 : vector<16x1xf32>
    %10 = tpu.iota {dimensions = array<i32: 1>} : vector<16x16xi32>
    %c16_i32 = arith.constant 16 : i32
    %11 = arith.muli %arg0, %c16_i32 : i32
    %12 = tpu.iota {dimensions = array<i32: 0>} : vector<16x16xi32>
    %13 = vector.broadcast %11 : i32 to vector<16x16xi32>
    %14 = arith.addi %13, %12 : vector<16x16xi32>
    %15 = arith.cmpi eq, %10, %14 : vector<16x16xi32>
    %cst_2 = arith.constant 0.000000e+00 : f32
    %16 = vector.broadcast %cst_2 : f32 to vector<16x16xf32>
    %17 = arith.select %15, %0, %16 : vector<16x16xi1>, vector<16x16xf32>
    %cst_3 = arith.constant dense<0.000000e+00> : vector<16xf32>
    %18 = vector.multi_reduction <add>, %17, %cst_3 [1] : vector<16x16xf32> to vector<16xf32>
    %19 = vector.shape_cast %18 : vector<16xf32> to vector<16x1xf32>
    %cst_4 = arith.constant 2.000000e+00 : f32
    %20 = vector.broadcast %cst_4 : f32 to vector<16x1xf32>
    %21 = arith.mulf %20, %19 : vector<16x1xf32>
    %22 = arith.subf %9, %21 : vector<16x1xf32>
    %c0_5 = arith.constant 0 : index
    %c0_6 = arith.constant 0 : index
    %23 = vector.load %arg2[%c0_5, %c0_6] : memref<16x1xf32, #tpu.memory_space<vmem>>, vector<16x1xf32>
    tpu.vector_store %arg2[%c0_5, %c0_6], %22 {strides = array<i32>} : memref<16x1xf32, #tpu.memory_space<vmem>>, vector<16x1xf32>,
    %cst_7 = arith.constant dense<0xFF800000> : vector<16xf32>
    %24 = vector.multi_reduction <maximumf>, %0, %cst_7 [0] : vector<16x16xf32> to vector<16xf32>
    %25 = vector.shape_cast %24 : vector<16xf32> to vector<1x16xf32>
    %26 = vector.shape_cast %25 : vector<1x16xf32> to vector<1x1x16xf32>
    %c0_8 = arith.constant 0 : index
    %c0_9 = arith.constant 0 : index
    %c0_10 = arith.constant 0 : index
    %27 = vector.load %arg3[%c0_8, %c0_9, %c0_10] : memref<1x1x16xf32, #tpu.memory_space<vmem>>, vector<1x1x16xf32>
    tpu.vector_store %arg3[%c0_8, %c0_9, %c0_10], %26 {strides = array<i32>} : memref<1x1x16xf32, #tpu.memory_space<vmem>>, vector<1x1x16xf32>,
    %28 = vector.broadcast %25 : vector<1x16xf32> to vector<16x16xf32>
    %29 = arith.subf %0, %28 : vector<16x16xf32>
    %30 = math.exp %29 : vector<16x16xf32>
    %cst_11 = arith.constant dense<0.000000e+00> : vector<16xf32>
    %31 = vector.multi_reduction <add>, %30, %cst_11 [0] : vector<16x16xf32> to vector<16xf32>
    %32 = vector.shape_cast %31 : vector<16xf32> to vector<1x16xf32>
    %33 = vector.shape_cast %32 : vector<1x16xf32> to vector<1x1x16xf32>
    %c0_12 = arith.constant 0 : index
    %c0_13 = arith.constant 0 : index
    %c0_14 = arith.constant 0 : index
    %34 = vector.load %arg4[%c0_12, %c0_13, %c0_14] : memref<1x1x16xf32, #tpu.memory_space<vmem>>, vector<1x1x16xf32>
    tpu.vector_store %arg4[%c0_12, %c0_13, %c0_14], %33 {strides = array<i32>} : memref<1x1x16xf32, #tpu.memory_space<vmem>>, vector<1x1x16xf32>,
    return
  }
  func.func @transform_0(%arg0: i32) -> (i32, i32) {
    %c0_i32 = arith.constant 0 : i32
    %c0_i32_0 = arith.constant 0 : i32
    return %arg0, %c0_i32 : i32, i32
  }
  func.func @transform_1(%arg0: i32) -> (i32, i32) {
    %c0_i32 = arith.constant 0 : i32
    %c0_i32_0 = arith.constant 0 : i32
    return %arg0, %c0_i32 : i32, i32
  }
  func.func @transform_2(%arg0: i32) -> (i32, i32, i32) {
    %c0_i32 = arith.constant 0 : i32
    %c0_i32_0 = arith.constant 0 : i32
    %c0_i32_1 = arith.constant 0 : i32
    return %arg0, %c0_i32, %c0_i32_0 : i32, i32, i32
  }
  func.func @transform_3(%arg0: i32) -> (i32, i32, i32) {
    %c0_i32 = arith.constant 0 : i32
    %c0_i32_0 = arith.constant 0 : i32
    %c0_i32_1 = arith.constant 0 : i32
    return %arg0, %c0_i32, %c0_i32_0 : i32, i32, i32
  }
}

</mosaic_0001>

<bundles_post_ra>
// kernel: clip_contrastive.1
= control target key start
LH: loop header
LB: loop body
LE: loop exit
PB: predicated region body
PF: predicated region fallthrough
CT: control target
= control target key end

     0   :  { %9 = vsyncpa [#allocation3], 0  ;;  %s159_s15 = smov [#allocation2]   ;;  %s160_s17 = smov 128   ;;  %s207_s0 = inlined_call_operand.hbm [shape: f32[16,16], index: 0, kind: input, shape index: {}]   ;;  %s208_s1 = inlined_call_operand.vmem [shape: f32[16,1], index: 1, kind: output, shape index: {0}]   ;;  %s209_s2 = inlined_call_operand.vmem [shape: f32[1,1,16], index: 2, kind: output, shape index: {1}]   ;;  %s210_s3 = inlined_call_operand.vmem [shape: f32[1,1,16], index: 3, kind: output, shape index: {2}]  }
   0x1   :  { %s14_s14 = sshll.u32 %s207_s0, 4  ;;  %s16_s16 = sshll.u32 %s159_s15, 4  ;;  %s15_s14 = int_to_ptr.hbm [resolvable:$true] %s14_s14  ;;  %s17_s16 = int_to_ptr.vmem [resolvable:$true] %s16_s16 }
   0x2   :  { %s161_s18 = smov 8  }
   0x3   :  { %22 = dma.hbm_to_vmem [thread:$0]  %s15_s14, 256, %s17_s16, [#allocation3], %s160_s17, %s160_s17, %s161_s18  }
   0x4   :  { %157 = dma.done.wait [#allocation3], 256  }
   0x5   :  { %158 = vsyncadd [#allocation3], 4294967040  ;;  %vm29_vm0 = vcmask 130048   ;;  %v27_v0 = vld [vmem:[#allocation2] sm:$0xff]  ;;  %v28_v1 = vld [vmem:[#allocation2 + $0x8] sm:$0xff]  ;;  %vm87_vm1 = vcmask 122880   ;;  %v54_v26 = vlaneseq }
   0x6   :  { %v30_v2 = vsel %vm29_vm0, %v27_v0, -inf  ;;  %v33_v3 = vsel %vm29_vm0, %v28_v1, -inf  ;;  %vm77_vm4 = vcmask 7168  }
   0x7   :  { %31 = vmax.xlane.f32.xlu0 %v30_v2  ;;  %v80_v4 = vmax.f32 %v30_v2, %v33_v3  ;;  %v55_v27 = vand.u32 127, %v54_v26  ;;  %v58_v28 = vshrl.u32 %v54_v26, 7 }
   0x9   :  { %v81_v5 = vrot.slane %v80_v4, 4  ;;  %vm63_vm2 = vcmp.eq.s32.totalorder %v55_v27, %v58_v28  ;;  %v59_v31 = vadd.s32 8, %v58_v28 }
   0xa   :  { %v65_v29 = vsel %vm63_vm2, %v27_v0, 0.0 }
   0xb   :  { %v82_v6 = vmax.f32 %v80_v4, %v81_v5  ;;  %v67_v30 = vsel %vm29_vm0, %v65_v29, 0.0  ;;  %vm64_vm3 = vcmp.eq.s32.totalorder %v55_v27, %v59_v31 }
   0xc   :  { %68 = vadd.xlane.f32.xlu2 %v67_v30  ;;  %v66_v32 = vsel %vm64_vm3, %v28_v1, 0.0 }
   0xd   :  { %v83_v7 = vrot.slane %v82_v6, 2  ;;  %v70_v33 = vsel %vm29_vm0, %v66_v32, 0.0 }
   0xf   :  { %34 = vmax.xlane.f32.xlu0 %v33_v3  ;;  %v84_v8 = vmax.f32 %v82_v6, %v83_v7 }
  0x11   :  { %v85_v9 = vrot.slane %v84_v8, 1 }
  0x13   :  { %v86_v10 = vmax.f32 %v84_v8, %v85_v9 }
  0x14   :  { %71 = vadd.xlane.f32.xlu2 %v70_v33 }
  0x15   :  { %88 = vst.msk [vmem:[%s209_s2] sm:$0x1] %vm87_vm1, %v86_v10  ;;  %v89_v11 = vsub.f32 %v27_v0, %v86_v10  ;;  %v90_v12 = vsub.f32 %v28_v1, %v86_v10 }
  0x17   :  { %v91_v13 = vmul.f32 1.442695, %v89_v11  ;;  %v93_v14 = vmul.f32 1.442695, %v90_v12 }
  0x19   :  { %121 = vpow2.f32 %v91_v13 }
  0x1a   :  { %123 = vpow2.f32 %v93_v14 }
  0x1f   :  { %v122_v15 = vpop.eup %121 }
  0x20   :  { %v124_v16 = vpop.eup %123  ;;  %v95_v17 = vsel %vm29_vm0, %v122_v15, 0.0 }
  0x21   :  { %v96_v18 = vsel %vm29_vm0, %v124_v16, 0.0 }
  0x22   :  { %v97_v19 = vadd.f32 %v96_v18, %v95_v17 }
  0x24   :  { %v98_v20 = vrot.slane %v97_v19, 4 }
  0x26   :  { %v99_v21 = vadd.f32 %v98_v20, %v97_v19 }
  0x28   :  { %v100_v22 = vrot.slane %v99_v21, 2 }
  0x2a   :  { %v101_v23 = vadd.f32 %v100_v22, %v99_v21 }
  0x2c   :  { %v102_v24 = vrot.slane %v101_v23, 1 }
  0x2e   :  { %v103_v25 = vadd.f32 %v102_v24, %v101_v23 }
  0x30   :  { %104 = vst.msk [vmem:[%s210_s3] sm:$0x1] %vm87_vm1, %v103_v25 }
  0x7a   :  { %v32_v34 = vpop.xlane.xlu0 %31 }
  0x7b   :  { %v36_v35 = vsub.f32 %v27_v0, %v32_v34 }
  0x7d   :  { %v38_v36 = vmul.f32 1.442695, %v36_v35 }
  0x7f   :  { %125 = vpow2.f32 %v38_v36  ;;  %v69_v45 = vpop.xlane.xlu2 %68 }
  0x80   :  { %v73_v49 = vmul.f32 2.0, %v69_v45 }
  0x82   :  { %v35_v37 = vpop.xlane.xlu0 %34 }
  0x83   :  { %v37_v38 = vsub.f32 %v28_v1, %v35_v37 }
  0x85   :  { %v126_v39 = vpop.eup %125  ;;  %v40_v40 = vmul.f32 1.442695, %v37_v38 }
  0x86   :  { %v42_v41 = vsel %vm29_vm0, %v126_v39, 0.0 }
  0x87   :  { %127 = vpow2.f32 %v40_v40  ;;  %43 = vadd.xlane.f32.xlu1 %v42_v41  ;;  %v72_v52 = vpop.xlane.xlu2 %71 }
  0x88   :  { %v74_v55 = vmul.f32 2.0, %v72_v52 }
  0x8d   :  { %v128_v42 = vpop.eup %127 }
  0x8e   :  { %v45_v43 = vsel %vm29_vm0, %v128_v42, 0.0 }
  0x8f   :  { %46 = vadd.xlane.f32.xlu1 %v45_v43 }
  0xfa   :  { %v44_v44 = vpop.xlane.xlu1 %43 }
  0xfb   :  { %129 = vlog2.f32 %v44_v44 }
 0x101   :  { %v130_v46 = vpop.eup %129 }
 0x102   :  { %v49_v47 = vmul.f32 0.6931472, %v130_v46  ;;  %v47_v48 = vpop.xlane.xlu1 %46 }
 0x103   :  { %131 = vlog2.f32 %v47_v48 }
 0x104   :  { %v52_v50 = vadd.f32 %v49_v47, %v32_v34 }
 0x106   :  { %v75_v51 = vsub.f32 %v52_v50, %v73_v49 }
 0x108   :  { %78 = vst.msk [vmem:[%s208_s1] sm:$0xff] %vm77_vm4, %v75_v51 }
 0x109   :  { %v132_v53 = vpop.eup %131 }
 0x10a   :  { %v51_v54 = vmul.f32 0.6931472, %v132_v53 }
 0x10c   :  { %v53_v56 = vadd.f32 %v51_v54, %v35_v37 }
 0x10e   :  { %v76_v57 = vsub.f32 %v53_v56, %v74_v55 }
 0x110   :  { %79 = vst.msk [vmem:[%s208_s1 + $0x8] sm:$0xff] %vm77_vm4, %v76_v57 }
 0x111   :  { %117 = vsyncpa [#allocation3], 1 }

</bundles_post_ra>
